<compile_context>
chip_gen: v6e
topology: v6e:2x2x1
jax: 0.10.0
libtpu: 0.0.40
codegen_flags: <defaults>
</compile_context>

<pallas_src>
import jax
import jax.numpy as jnp
from jax.experimental import pallas as pl
from jax.experimental.pallas import tpu as pltpu


# --------------------------------------------------------------------------- #
# Kernels
# --------------------------------------------------------------------------- #
def _mapping_net_kernel(x_ref, w1_ref, b1_ref, w2_ref, b2_ref, o_ref):
    # x_ref: (tb, Hp) bf16; w1_ref: (Hp, H2p) bf16; b1_ref: (1, H2p) f32;
    # w2_ref: (H2p, H2p) bf16; b2_ref: (1, H2p) f32; o_ref: (tb, H2p)
    h = jnp.dot(x_ref[...], w1_ref[...], preferred_element_type=jnp.float32)
    h = jnp.maximum(h + b1_ref[...], 0.0)
    out = jnp.dot(h.astype(jnp.bfloat16), w2_ref[...],
                  preferred_element_type=jnp.float32)
    o_ref[...] = (out + b2_ref[...]).astype(o_ref.dtype)


def _mapping_net_kernel_ntiled(x_ref, w1_ref, b1_ref, w2_ref, b2_ref, o_ref,
                               h_ref):
    # Grid = (batch tiles, W2 column tiles).  h is computed once per batch tile
    # and reused across the streamed W2 column tiles.
    @pl.when(pl.program_id(1) == 0)
    def _():
        h = jnp.dot(x_ref[...], w1_ref[...], preferred_element_type=jnp.float32)
        h = jnp.maximum(h + b1_ref[...], 0.0)
        h_ref[...] = h.astype(jnp.bfloat16)

    out = jnp.dot(h_ref[...], w2_ref[...], preferred_element_type=jnp.float32)
    o_ref[...] = (out + b2_ref[...]).astype(o_ref.dtype)


# --------------------------------------------------------------------------- #
# Helpers
# --------------------------------------------------------------------------- #
def _round_up(x: int, m: int) -> int:
    return ((x + m - 1) // m) * m


def _chip_generation():
    try:
        kind = jax.devices()[0].device_kind.lower()
    except Exception:
        return None
    if "v5 lite" in kind or "v5e" in kind or "v5lite" in kind:
        return "v5e"
    if "v6" in kind:
        return "v6e"
    if "v7" in kind:
        return "v7x"
    return None


def _vmem_cap_bytes(gen) -> int:
    try:
        phys = int(pltpu.get_tpu_info().vmem_capacity_bytes)
    except Exception:
        phys = (64 << 20) if gen == "v7x" else (128 << 20)
    return int(phys * 0.85)


def _resident_spec(shape, index_map):
    """Single-buffered BlockSpec for grid-invariant (resident) operands."""
    try:
        return pl.BlockSpec(shape, index_map, pipeline_mode=pl.Buffered(1))
    except (TypeError, AttributeError):
        return pl.BlockSpec(shape, index_map)


def _default_tile_b(B: int, Hp: int, H2p: int, gen) -> int:
    B8 = _round_up(max(B, 8), 8)
    # Tiny-problem fast path: one grid step, no per-step pipeline overhead.
    if B8 * (Hp + 2 * H2p) * 4 <= (1 << 20) and B8 <= 256:
        return B8
    # MXU-aligned tiles: 256 on v6e/v7x, 128 on v5e / unknown.
    tile = 128 if gen in ("v5e", None) else 256
    if gen == "v7x":
        # Guarantee >= 2 grid steps so the parallel axis splits across both TCs.
        while tile > 128 and B8 < 2 * tile:
            tile //= 2
    while tile > 8 and B8 < tile:
        tile //= 2
    return max(8, tile)


def _default_tile_n(H2p: int, gen) -> int:
    prefer = 256 if gen == "v5e" else 512
    for cand in (prefer, 256, 128):
        if H2p % cand == 0:
            return cand
    return 128


def _vmem_limit_bytes(tile_b, Hp, H2p, tile_n, out_itemsize, ntiled, vmem_cap):
    x_tile = tile_b * Hp * 2                              # bf16, double-buffered
    if ntiled:
        out_tile = tile_b * tile_n * out_itemsize
        resident = Hp * H2p * 2 + 8 * H2p * 4             # W1 + b1 (1x)
        streamed = 2 * (H2p * tile_n * 2 + 8 * tile_n * 4)  # W2/b2 tiles (2x)
        h_live = tile_b * H2p * 2                         # bf16 scratch
    else:
        out_tile = tile_b * H2p * out_itemsize
        resident = (Hp * H2p + H2p * H2p) * 2 + 2 * 8 * H2p * 4  # W1+W2+b (1x)
        streamed = 0
        h_live = tile_b * H2p * 4                         # f32 h intermediate
    need = 2 * (x_tile + out_tile) + resident + streamed + h_live + (4 << 20)
    return int(min(max(need, 16 << 20), vmem_cap))


# --------------------------------------------------------------------------- #
# Forward
# --------------------------------------------------------------------------- #
def mapping_net_forward(x, w1, b1, w2, b2, *, tile_b=None, tile_n=None,
                        ntiled=None, out_dtype=None):
    """x: (B, H); w1: (H, 2H); b1: (2H,); w2: (2H, 2H); b2: (2H,).

    Weights are passed pre-transposed to (in_features, out_features)
    (PyTorch nn.Linear stores (out, in)); computes relu(x@w1+b1)@w2+b2.
    """
    B, H = x.shape
    H2 = w1.shape[1]
    assert w1.shape == (H, H2) and w2.shape == (H2, H2)
    assert b1.shape == (H2,) and b2.shape == (H2,)
    in_dtype = x.dtype

    gen = _chip_generation()
    vmem_cap = _vmem_cap_bytes(gen)

    # --- feature padding (zeros => numerically exact) -------------------------
    Hp = max(_round_up(H, 128), 128)
    H2p = max(_round_up(H2, 128), 128)
    if Hp != H:
        x = jnp.pad(x, ((0, 0), (0, Hp - H)))
        w1 = jnp.pad(w1, ((0, Hp - H), (0, 0)))
    if H2p != H2:
        w1 = jnp.pad(w1, ((0, 0), (0, H2p - H2)))
        b1 = jnp.pad(b1, (0, H2p - H2))
        w2 = jnp.pad(w2, ((0, H2p - H2), (0, H2p - H2)))
        b2 = jnp.pad(b2, (0, H2p - H2))

    # --- batch tiling / padding ----------------------------------------------
    if tile_b is None:
        tile_b = _default_tile_b(B, Hp, H2p, gen)
    tile_b = max(8, _round_up(int(tile_b), 8))
    Bp = _round_up(B, tile_b)
    if Bp != B:
        x = jnp.pad(x, ((0, Bp - B), (0, 0)))

    # --- dtypes: host-side bf16 cast of MXU operands, f32 biases --------------
    xb = x.astype(jnp.bfloat16)
    w1b = w1.astype(jnp.bfloat16)
    w2b = w2.astype(jnp.bfloat16)
    b1_2d = b1.reshape(1, H2p).astype(jnp.float32)
    b2_2d = b2.reshape(1, H2p).astype(jnp.float32)

    if out_dtype is None:
        out_dtype = in_dtype          # f32 keeps the module's output dtype
    out_itemsize = jnp.dtype(out_dtype).itemsize

    # --- path selection: weight-resident vs W2 column-streaming ---------------
    resident_w_bytes = (Hp * H2p + H2p * H2p) * 2
    if ntiled is None:
        ntiled = resident_w_bytes > int(0.55 * vmem_cap)

    flops = 2 * Bp * Hp * H2p + 2 * Bp * H2p * H2p
    bytes_accessed = (Bp * Hp * 2 + resident_w_bytes + 2 * H2p * 4
                      + Bp * H2p * out_itemsize)
    cost = pl.CostEstimate(flops=flops, transcendentals=0,
                           bytes_accessed=int(bytes_accessed))

    if not ntiled:
        grid = (Bp // tile_b,)
        vmem_limit = _vmem_limit_bytes(tile_b, Hp, H2p, H2p, out_itemsize,
                                       False, vmem_cap)
        out = pl.pallas_call(
            _mapping_net_kernel,
            out_shape=jax.ShapeDtypeStruct((Bp, H2p), out_dtype),
            grid_spec=pltpu.PrefetchScalarGridSpec(
                num_scalar_prefetch=0,
                grid=grid,
                in_specs=[
                    pl.BlockSpec((tile_b, Hp), lambda i: (i, 0)),   # x (pipelined)
                    _resident_spec((Hp, H2p), lambda i: (0, 0)),    # W1 (1x buffer)
                    _resident_spec((1, H2p), lambda i: (0, 0)),     # b1
                    _resident_spec((H2p, H2p), lambda i: (0, 0)),   # W2 (1x buffer)
                    _resident_spec((1, H2p), lambda i: (0, 0)),     # b2
                ],
                out_specs=pl.BlockSpec((tile_b, H2p), lambda i: (i, 0)),
            ),
            compiler_params=pltpu.CompilerParams(
                dimension_semantics=("parallel",),
                vmem_limit_bytes=vmem_limit,
            ),
            cost_estimate=cost,
        )(xb, w1b, b1_2d, w2b, b2_2d)
    else:
        if tile_n is None:
            tile_n = _default_tile_n(H2p, gen)
        assert H2p % tile_n == 0
        grid = (Bp // tile_b, H2p // tile_n)
        vmem_limit = _vmem_limit_bytes(tile_b, Hp, H2p, tile_n, out_itemsize,
                                       True, vmem_cap)
        out = pl.pallas_call(
            _mapping_net_kernel_ntiled,
            out_shape=jax.ShapeDtypeStruct((Bp, H2p), out_dtype),
            grid_spec=pltpu.PrefetchScalarGridSpec(
                num_scalar_prefetch=0,
                grid=grid,
                in_specs=[
                    pl.BlockSpec((tile_b, Hp), lambda i, j: (i, 0)),    # x
                    _resident_spec((Hp, H2p), lambda i, j: (0, 0)),     # W1 (1x)
                    _resident_spec((1, H2p), lambda i, j: (0, 0)),      # b1
                    pl.BlockSpec((H2p, tile_n), lambda i, j: (0, j)),   # W2 cols
                    pl.BlockSpec((1, tile_n), lambda i, j: (0, j)),     # b2 cols
                ],
                out_specs=pl.BlockSpec((tile_b, tile_n), lambda i, j: (i, j)),
                scratch_shapes=[pltpu.VMEM((tile_b, H2p), jnp.bfloat16)],
            ),
            compiler_params=pltpu.CompilerParams(
                dimension_semantics=("parallel", "arbitrary"),
                vmem_limit_bytes=vmem_limit,
            ),
            cost_estimate=cost,
        )(xb, w1b, b1_2d, w2b, b2_2d)

    # Strip batch / feature padding (no-op slices if nothing was padded).
    return out[:B, :H2]


# --------------------------------------------------------------------------- #
# Self-test
# --------------------------------------------------------------------------- #
if __name__ == "__main__":
    # Shapes consistent with the module: hidden_size=32, batch=64.
    B, H = 64, 32
    H2 = 2 * H

    key = jax.random.PRNGKey(0)
    kx, kw1, kb1, kw2, kb2 = jax.random.split(key, 5)

    x = jax.random.normal(kx, (B, H), dtype=jnp.float32)
    # PyTorch nn.Linear weight is (out, in); we build them directly as (in, out).
    w1 = jax.random.normal(kw1, (H, H2), dtype=jnp.float32) * 0.1
    b1 = jax.random.normal(kb1, (H2,), dtype=jnp.float32) * 0.1
    w2 = jax.random.normal(kw2, (H2, H2), dtype=jnp.float32) * 0.1
    b2 = jax.random.normal(kb2, (H2,), dtype=jnp.float32) * 0.1

    out = jax.block_until_ready(mapping_net_forward(x, w1, b1, w2, b2))
    assert out.shape == (B, H2)

    # Reference 1: same bf16-operand / f32-accumulation recipe as the kernel.
    ref_h = jnp.maximum(
        jnp.dot(x.astype(jnp.bfloat16), w1.astype(jnp.bfloat16),
                preferred_element_type=jnp.float32) + b1, 0.0)
    ref_bf16 = jnp.dot(ref_h.astype(jnp.bfloat16), w2.astype(jnp.bfloat16),
                       preferred_element_type=jnp.float32) + b2
    assert jnp.allclose(out, ref_bf16, atol=5e-3, rtol=5e-3), \
        "mismatch vs bf16-matched reference"

    # Reference 2: pure f32 module semantics (looser tol due to bf16 MXU operands).
    ref_f32 = jnp.maximum(x @ w1 + b1, 0.0) @ w2 + b2
    assert jnp.allclose(out, ref_f32, atol=3e-2, rtol=3e-2), \
        "mismatch vs f32 reference"

    # Also exercise the W2 column-streaming (large-H) path at small shapes.
    H_b = 128
    H2_b = 2 * H_b
    x_b = jax.random.normal(kx, (B, H_b), dtype=jnp.float32)
    w1_b = jax.random.normal(kw1, (H_b, H2_b), dtype=jnp.float32) * 0.05
    b1_b = jax.random.normal(kb1, (H2_b,), dtype=jnp.float32) * 0.05
    w2_b = jax.random.normal(kw2, (H2_b, H2_b), dtype=jnp.float32) * 0.05
    b2_b = jax.random.normal(kb2, (H2_b,), dtype=jnp.float32) * 0.05

    out2 = jax.block_until_ready(
        mapping_net_forward(x_b, w1_b, b1_b, w2_b, b2_b,
                            ntiled=True, tile_n=128))
    ref2 = jnp.maximum(x_b @ w1_b + b1_b, 0.0) @ w2_b + b2_b
    assert out2.shape == (B, H2_b)
    assert jnp.allclose(out2, ref2, atol=5e-2, rtol=5e-2), \
        "mismatch vs f32 reference (ntiled path)"

    print("KERNEL_OK")
</pallas_src>

<mosaic_0001>
module attributes {stable_mosaic.version = 11 : i64} {
  func.func @_mapping_net_kernel(%arg0: i32, %arg1: memref<64x128xbf16, #tpu.memory_space<vmem>>, %arg2: memref<128x128xbf16, #tpu.memory_space<vmem>>, %arg3: memref<1x128xf32, #tpu.memory_space<vmem>>, %arg4: memref<128x128xbf16, #tpu.memory_space<vmem>>, %arg5: memref<1x128xf32, #tpu.memory_space<vmem>>, %arg6: memref<64x128xf32, #tpu.memory_space<vmem>>) attributes {dimension_semantics = [#tpu.dimension_semantics<parallel>], iteration_bounds = array<i64: 1>, scalar_prefetch = 0 : i64, scratch_operands = 0 : i64, tpu.core_type = #tpu.core_type<tc>, window_params = [{transform_indices = @transform_0, window_bounds = array<i64: 64, 128>}, {pipeline_mode = #tpu.pipeline_mode<synchronous>, transform_indices = @transform_1, window_bounds = array<i64: 128, 128>}, {pipeline_mode = #tpu.pipeline_mode<synchronous>, transform_indices = @transform_2, window_bounds = array<i64: 1, 128>}, {pipeline_mode = #tpu.pipeline_mode<synchronous>, transform_indices = @transform_3, window_bounds = array<i64: 128, 128>}, {pipeline_mode = #tpu.pipeline_mode<synchronous>, transform_indices = @transform_4, window_bounds = array<i64: 1, 128>}, {transform_indices = @transform_5, window_bounds = array<i64: 64, 128>}]} {
    %c0 = arith.constant 0 : index
    %c0_0 = arith.constant 0 : index
    %0 = vector.load %arg1[%c0, %c0_0] : memref<64x128xbf16, #tpu.memory_space<vmem>>, vector<64x128xbf16>
    %c0_1 = arith.constant 0 : index
    %c0_2 = arith.constant 0 : index
    %1 = vector.load %arg2[%c0_1, %c0_2] : memref<128x128xbf16, #tpu.memory_space<vmem>>, vector<128x128xbf16>
    %cst = arith.constant dense<0.000000e+00> : vector<64x128xf32>
    %2 = tpu.matmul %0, %1, %cst {dimension_numbers = #tpu.dot_dimension_numbers<[1], [0], [0], [1], [0, 0, 1, 1], [], []>} : vector<64x128xbf16>, vector<128x128xbf16>, vector<64x128xf32> -> vector<64x128xf32>
    %c0_3 = arith.constant 0 : index
    %c0_4 = arith.constant 0 : index
    %3 = vector.load %arg3[%c0_3, %c0_4] : memref<1x128xf32, #tpu.memory_space<vmem>>, vector<1x128xf32>
    %4 = vector.broadcast %3 : vector<1x128xf32> to vector<64x128xf32>
    %5 = arith.addf %2, %4 : vector<64x128xf32>
    %cst_5 = arith.constant 0.000000e+00 : f32
    %6 = vector.broadcast %cst_5 : f32 to vector<64x128xf32>
    %7 = arith.maximumf %5, %6 : vector<64x128xf32>
    %8 = arith.truncf %7 : vector<64x128xf32> to vector<64x128xbf16>
    %c0_6 = arith.constant 0 : index
    %c0_7 = arith.constant 0 : index
    %9 = vector.load %arg4[%c0_6, %c0_7] : memref<128x128xbf16, #tpu.memory_space<vmem>>, vector<128x128xbf16>
    %cst_8 = arith.constant dense<0.000000e+00> : vector<64x128xf32>
    %10 = tpu.matmul %8, %9, %cst_8 {dimension_numbers = #tpu.dot_dimension_numbers<[1], [0], [0], [1], [0, 0, 1, 1], [], []>} : vector<64x128xbf16>, vector<128x128xbf16>, vector<64x128xf32> -> vector<64x128xf32>
    %c0_9 = arith.constant 0 : index
    %c0_10 = arith.constant 0 : index
    %11 = vector.load %arg5[%c0_9, %c0_10] : memref<1x128xf32, #tpu.memory_space<vmem>>, vector<1x128xf32>
    %12 = vector.broadcast %11 : vector<1x128xf32> to vector<64x128xf32>
    %13 = arith.addf %10, %12 : vector<64x128xf32>
    %c0_11 = arith.constant 0 : index
    %c0_12 = arith.constant 0 : index
    %14 = vector.load %arg6[%c0_11, %c0_12] : memref<64x128xf32, #tpu.memory_space<vmem>>, vector<64x128xf32>
    tpu.vector_store %arg6[%c0_11, %c0_12], %13 {strides = array<i32>} : memref<64x128xf32, #tpu.memory_space<vmem>>, vector<64x128xf32>,
    return
  }
  func.func @transform_0(%arg0: i32) -> (i32, i32) {
    %c0_i32 = arith.constant 0 : i32
    %c0_i32_0 = arith.constant 0 : i32
    return %arg0, %c0_i32 : i32, i32
  }
  func.func @transform_1(%arg0: i32) -> (i32, i32) {
    %c0_i32 = arith.constant 0 : i32
    %c0_i32_0 = arith.constant 0 : i32
    %c0_i32_1 = arith.constant 0 : i32
    return %c0_i32, %c0_i32_0 : i32, i32
  }
  func.func @transform_2(%arg0: i32) -> (i32, i32) {
    %c0_i32 = arith.constant 0 : i32
    %c0_i32_0 = arith.constant 0 : i32
    %c0_i32_1 = arith.constant 0 : i32
    return %c0_i32, %c0_i32_0 : i32, i32
  }
  func.func @transform_3(%arg0: i32) -> (i32, i32) {
    %c0_i32 = arith.constant 0 : i32
    %c0_i32_0 = arith.constant 0 : i32
    %c0_i32_1 = arith.constant 0 : i32
    return %c0_i32, %c0_i32_0 : i32, i32
  }
  func.func @transform_4(%arg0: i32) -> (i32, i32) {
    %c0_i32 = arith.constant 0 : i32
    %c0_i32_0 = arith.constant 0 : i32
    %c0_i32_1 = arith.constant 0 : i32
    return %c0_i32, %c0_i32_0 : i32, i32
  }
  func.func @transform_5(%arg0: i32) -> (i32, i32) {
    %c0_i32 = arith.constant 0 : i32
    %c0_i32_0 = arith.constant 0 : i32
    return %arg0, %c0_i32 : i32, i32
  }
}

</mosaic_0001>

<bundles_post_ra>
// kernel: tpu_custom_call.1
= control target key start
LH: loop header
LB: loop body
LE: loop exit
PB: predicated region body
PF: predicated region fallthrough
CT: control target
= control target key end

     0   :  { %10 = vsyncpa [#allocation3], 0  ;;  %s669_s0 = inlined_call_operand.hbm [shape: bf16[64,128], index: 0, kind: input, shape index: {}]   ;;  %s670_s1 = inlined_call_operand.hbm [shape: bf16[128,128], index: 1, kind: input, shape index: {}]   ;;  %s671_s2 = inlined_call_operand.vmem [shape: f32[1,128], index: 2, kind: input, shape index: {}]   ;;  %s672_s3 = inlined_call_operand.hbm [shape: bf16[128,128], index: 3, kind: input, shape index: {}]   ;;  %s673_s4 = inlined_call_operand.vmem [shape: f32[1,128], index: 4, kind: input, shape index: {}]   ;;  %s674_s5 = inlined_call_operand.hbm [shape: f32[64,128], index: 5, kind: output, shape index: {}]  }
   0x1   :  { %11 = vsyncpa [#allocation6], 0 }
   0x2   :  { %12 = vsyncpa [#allocation4], 0  ;;  %s613_s18 = smov [#allocation5]   ;;  %s614_s20 = smov [#allocation2]  }
   0x3   :  { %s30_s19 = sshll.u32 %s613_s18, 4  ;;  %s18_s21 = sshll.u32 %s614_s20, 4  ;;  %s31_s19 = int_to_ptr.vmem [resolvable:$true] %s30_s19  ;;  %s19_s21 = int_to_ptr.vmem [resolvable:$true] %s18_s21 }
   0x4   :  { %s535_s22 = scalar_lea.vmem %s31_s19, 1024  ;;  %p540_p1 = scmp.lt.s32.totalorder %s31_s19, %s31_s19 }
   0x5   :  { %p536_p0 = scmp.ne.s32.totalorder %s31_s19, %s535_s22  ;;  %p541_p2 = scmp.lt.s32.totalorder %s535_s22, %s535_s22 }
   0x7   :  { %p542_p3 = por %p541_p2, %p540_p1 }
   0x9   :  { %p543_p4 = pnand %p542_p3, %p536_p0 }
   0xb   :  { %546 = shalt.err (!%p543_p4)
}
   0xc   :  { %s615_s23 = smov 64   ;;  %s616_s24 = smov 4  }
   0xd   :  { %36 = dma.hbm_to_vmem [thread:$0]  %s670_s1, 1024, %s31_s19, [#allocation6], %s615_s23, %s615_s23, %s616_s24  }
   0xe   :  { %s555_s27 = scalar_lea.vmem %s19_s21, 512  ;;  %p560_p6 = scmp.lt.s32.totalorder %s19_s21, %s19_s21 }
   0xf   :  { %p556_p5 = scmp.ne.s32.totalorder %s19_s21, %s555_s27  ;;  %p561_p7 = scmp.lt.s32.totalorder %s555_s27, %s555_s27 }
  0x11   :  { %p562_p8 = por %p561_p7, %p560_p6 }
  0x13   :  { %p563_p9 = pnand %p562_p8, %p556_p5 }
  0x15   :  { %566 = shalt.err (!%p563_p9)
}
  0x16   :  { %24 = dma.hbm_to_vmem [thread:$0]  %s669_s0, 512, %s19_s21, [#allocation3], %s615_s23, %s615_s23, %s616_s24  }
  0x17   :  { %s617_s30 = smov [#allocation7]  }
  0x18   :  { %s44_s6 = sshll.u32 %s617_s30, 4  ;;  %s45_s6 = int_to_ptr.vmem [resolvable:$true] %s44_s6 }
  0x19   :  { %s575_s7 = scalar_lea.vmem %s45_s6, 1024  ;;  %p580_p11 = scmp.lt.s32.totalorder %s45_s6, %s45_s6 }
  0x1a   :  { %p576_p10 = scmp.ne.s32.totalorder %s45_s6, %s575_s7  ;;  %p581_p12 = scmp.lt.s32.totalorder %s575_s7, %s575_s7 }
  0x1c   :  { %p582_p13 = por %p581_p12, %p580_p11 }
  0x1e   :  { %p583_p0 = pnand %p582_p13, %p576_p10 }
  0x20   :  { %586 = shalt.err (!%p583_p0)
}
  0x21   :  { %50 = dma.hbm_to_vmem [thread:$0]  %s672_s3, 1024, %s45_s6, [#allocation6], %s615_s23, %s615_s23, %s616_s24  }
  0x22   :  { %607 = dma.done.wait [#allocation3], 512  }
  0x23   :  { %608 = vsyncadd [#allocation3], 4294966784 }
  0x24   :  { %609 = dma.done.wait [#allocation6], 2048  }
  0x25   :  { %610 = vsyncadd [#allocation6], 4294965248  ;;  %v507_v0 = vld [vmem:[#allocation5 + $0x38] sm:$0xff]   ;;  %v508_v1 = vld [vmem:[#allocation5 + $0x30] sm:$0xff]   ;;  %s618_s10 = smov [#allocation8]  }
  0x26   :  { %451 = vmatprep.subr.bf16.mxu0 %v507_v0  ;;  %v509_v2 = vld [vmem:[#allocation5 + $0x28] sm:$0xff]   ;;  %v510_v3 = vld [vmem:[#allocation5 + $0x20] sm:$0xff]   ;;  %v511_v5 = vld [vmem:[#allocation5 + $0x18] sm:$0xff]   ;;  %s392_s11 = sshll.u32 %s618_s10, 4  ;;  %s393_s11 = int_to_ptr.vmem [resolvable:$true] %s392_s11 }
  0x27   :  { %452 = vmatpush3.bf16.msra.mxu0 %v507_v0  ;;  %v515_v4 = vld [vmem:[#allocation2] sm:$0xff]   ;;  %v519_v6 = vld [vmem:[#allocation7 + $0x38] sm:$0xff]   ;;  %v520_v7 = vld [vmem:[#allocation7 + $0x30] sm:$0xff]   ;;  %p592_p2 = scmp.lt.s32.totalorder %s393_s11, %s393_s11 }
  0x28   :  { %453 = vmatprep.subr.bf16.mxu0 %v508_v1  ;;  %467 = vmatprep.mubr.bf16.mxu0 %v515_v4  ;;  %v512_v8 = vld [vmem:[#allocation5 + $0x10] sm:$0xff]   ;;  %v521_v9 = vld [vmem:[#allocation7 + $0x28] sm:$0xff]   ;;  %v522_v11 = vld [vmem:[#allocation7 + $0x20] sm:$0xff]  }
  0x29   :  { %475 = vmatprep.subr.bf16.mxu1 %v519_v6  ;;  %v513_v10 = vld [vmem:[#allocation5 + $0x8] sm:$0xff]   ;;  %v514_v12 = vld [vmem:[#allocation5] sm:$0xff]   ;;  %v523_v13 = vld [vmem:[#allocation7 + $0x18] sm:$0xff]  }
  0x2a   :  { %476 = vmatpush3.bf16.msra.mxu1 %v519_v6  ;;  %v516_v14 = vld [vmem:[#allocation2 + $0x8] sm:$0xff]   ;;  %v517_v15 = vld [vmem:[#allocation2 + $0x10] sm:$0xff]   ;;  %v518_v16 = vld [vmem:[#allocation2 + $0x18] sm:$0xff]  }
  0x2b   :  { %454 = vmatpush3.bf16.msra.mxu0 %v508_v1  ;;  %477 = vmatprep.subr.bf16.mxu1 %v520_v7  ;;  %v524_v17 = vld [vmem:[#allocation7 + $0x10] sm:$0xff]   ;;  %v525_v18 = vld [vmem:[#allocation7 + $0x8] sm:$0xff]   ;;  %v526_v19 = vld [vmem:[#allocation7] sm:$0xff]  }
  0x2c   :  { %455 = vmatprep.subr.bf16.mxu0 %v509_v2  ;;  %v405_v22 = vld [vmem:[%s671_s2] ss:$0 sm:$0xff] }
  0x2d   :  { %v418_v49 = vld [vmem:[%s673_s4] ss:$0 sm:$0xff]  ;;  %s587_s4 = scalar_lea.vmem %s393_s11, 1024 }
  0x2e   :  { %478 = vmatpush3.bf16.msra.mxu1 %v520_v7  ;;  %p588_p1 = scmp.ne.s32.totalorder %s393_s11, %s587_s4  ;;  %p593_p3 = scmp.lt.s32.totalorder %s587_s4, %s587_s4 }
  0x2f   :  { %456 = vmatpush3.bf16.msra.mxu0 %v509_v2  ;;  %479 = vmatprep.subr.bf16.mxu1 %v521_v9 }
  0x30   :  { %457 = vmatprep.subr.bf16.mxu0 %v510_v3  ;;  %p594_p4 = por %p593_p3, %p592_p2 }
  0x32   :  { %480 = vmatpush3.bf16.msra.mxu1 %v521_v9  ;;  %p595_p5 = pnand %p594_p4, %p588_p1 }
  0x33   :  { %458 = vmatpush3.bf16.msra.mxu0 %v510_v3  ;;  %481 = vmatprep.subr.bf16.mxu1 %v522_v11 }
  0x34   :  { %459 = vmatprep.subr.bf16.mxu0 %v511_v5 }
  0x36   :  { %482 = vmatpush3.bf16.msra.mxu1 %v522_v11 }
  0x37   :  { %460 = vmatpush3.bf16.msra.mxu0 %v511_v5  ;;  %483 = vmatprep.subr.bf16.mxu1 %v523_v13 }
  0x38   :  { %461 = vmatprep.subr.bf16.mxu0 %v512_v8 }
  0x3a   :  { %484 = vmatpush3.bf16.msra.mxu1 %v523_v13 }
  0x3b   :  { %462 = vmatpush3.bf16.msra.mxu0 %v512_v8  ;;  %485 = vmatprep.subr.bf16.mxu1 %v524_v17 }
  0x3c   :  { %463 = vmatprep.subr.bf16.mxu0 %v513_v10 }
  0x3e   :  { %486 = vmatpush3.bf16.msra.mxu1 %v524_v17 }
  0x3f   :  { %464 = vmatpush3.bf16.msra.mxu0 %v513_v10  ;;  %487 = vmatprep.subr.bf16.mxu1 %v525_v18 }
  0x40   :  { %465 = vmatprep.subr.bf16.mxu0 %v514_v12 }
  0x42   :  { %488 = vmatpush3.bf16.msra.mxu1 %v525_v18 }
  0x43   :  { %466 = vmatpush3.bf16.msra.mxu0 %v514_v12  ;;  %489 = vmatprep.subr.bf16.mxu1 %v526_v19 }
  0x46   :  { %468 = vmatmul.mubr.bf16.vlgmr.msra.gmra.mxu0 %v516_v14  ;;  %490 = vmatpush3.bf16.msra.mxu1 %v526_v19 }
  0x47   :  { %471 = vmatprep.mubr.bf16.mxu0 %v517_v15 }
  0x4e   :  { %472 = vmatmul.mubr.bf16.gmra.mxu0 %v518_v16 }
 0x106   :  { %v469_v20 = vpop.f32.mrf.mxu0 }
 0x107   :  { %v209_v26 = vadd.f32 %v469_v20, %v405_v22 }
 0x108   :  { %v200_v21 = vpop.f32.mrf.mxu0 }
 0x109   :  { %v201_v24 = vadd.f32 %v405_v22, %v200_v21  ;;  %v233_v33 = vmax.f32 %v209_v26, 0.0 }
 0x10a   :  { %v470_v23 = vpop.f32.mrf.mxu0 }
 0x10b   :  { %v212_v25 = vadd.f32 %v470_v23, %v405_v22  ;;  %v231_v31 = vmax.f32 %v201_v24, 0.0 }
 0x10c   :  { %v203_v27 = vpop.f32.mrf.mxu0 }
 0x10d   :  { %v204_v28 = vadd.f32 %v405_v22, %v203_v27  ;;  %v234_v29 = vmax.f32 %v212_v25, 0.0 }
 0x10e   :  { %v473_v30 = vpop.f32.mrf.mxu0 }
 0x10f   :  { %v232_v32 = vmax.f32 %v204_v28, 0.0  ;;  %v240_v36 = vpack.c.bf16 %v234_v29, %v233_v33  ;;  %v225_v40 = vadd.f32 %v473_v30, %v405_v22 }
 0x110   :  { %v216_v34 = vpop.f32.mrf.mxu0 }
 0x111   :  { %v239_v35 = vpack.c.bf16 %v232_v32, %v231_v31  ;;  %v217_v38 = vadd.f32 %v405_v22, %v216_v34  ;;  %v237_v46 = vmax.f32 %v225_v40, 0.0 }
 0x112   :  { %v474_v37 = vpop.f32.mrf.mxu0 }
 0x113   :  { %v228_v39 = vadd.f32 %v474_v37, %v405_v22  ;;  %491 = vmatprep.mubr.bf16.mxu1 %v239_v35  ;;  %v235_v44 = vmax.f32 %v217_v38, 0.0 }
 0x114   :  { %v219_v41 = vpop.f32.mrf.mxu0  ;;  %492 = vmatmul.mubr.bf16.vlgmr.msra.gmra.mxu1 %v240_v36 }
 0x115   :  { %v220_v42 = vadd.f32 %v405_v22, %v219_v41  ;;  %v238_v43 = vmax.f32 %v228_v39, 0.0 }
 0x117   :  { %v236_v45 = vmax.f32 %v220_v42, 0.0  ;;  %v242_v48 = vpack.c.bf16 %v238_v43, %v237_v46 }
 0x119   :  { %v241_v47 = vpack.c.bf16 %v236_v45, %v235_v44 }
 0x11b   :  { %495 = vmatprep.mubr.bf16.mxu1 %v241_v47 }
 0x11c   :  { %496 = vmatmul.mubr.bf16.gmra.mxu1 %v242_v48 }
 0x1d4   :  { %v493_v50 = vpop.f32.mrf.mxu1 }
 0x1d5   :  { %v357_v51 = vadd.f32 %v493_v50, %v418_v49 }
 0x1d6   :  { %v348_v52 = vpop.f32.mrf.mxu1 }
 0x1d7   :  { %381 = vst [vmem:[#allocation8 + $0x10] sm:$0xff] %v357_v51  ;;  %v349_v53 = vadd.f32 %v418_v49, %v348_v52 }
 0x1d8   :  { %v494_v54 = vpop.f32.mrf.mxu1 }
 0x1d9   :  { %379 = vst [vmem:[#allocation8] sm:$0xff] %v349_v53  ;;  %v360_v55 = vadd.f32 %v494_v54, %v418_v49 }
 0x1da   :  { %v351_v56 = vpop.f32.mrf.mxu1 }
 0x1db   :  { %382 = vst [vmem:[#allocation8 + $0x18] sm:$0xff] %v360_v55  ;;  %v352_v57 = vadd.f32 %v418_v49, %v351_v56 }
 0x1dc   :  { %v497_v58 = vpop.f32.mrf.mxu1 }
 0x1dd   :  { %380 = vst [vmem:[#allocation8 + $0x8] sm:$0xff] %v352_v57  ;;  %v373_v59 = vadd.f32 %v497_v58, %v418_v49 }
 0x1de   :  { %v364_v60 = vpop.f32.mrf.mxu1 }
 0x1df   :  { %385 = vst [vmem:[#allocation8 + $0x30] sm:$0xff] %v373_v59  ;;  %v365_v61 = vadd.f32 %v418_v49, %v364_v60 }
 0x1e0   :  { %v498_v62 = vpop.f32.mrf.mxu1 }
 0x1e1   :  { %383 = vst [vmem:[#allocation8 + $0x20] sm:$0xff] %v365_v61  ;;  %v376_v63 = vadd.f32 %v498_v62, %v418_v49 }
 0x1e2   :  { %v367_v0 = vpop.f32.mrf.mxu1 }
 0x1e3   :  { %386 = vst [vmem:[#allocation8 + $0x38] sm:$0xff] %v376_v63  ;;  %v368_v1 = vadd.f32 %v418_v49, %v367_v0 }
 0x1e5   :  { %384 = vst [vmem:[#allocation8 + $0x28] sm:$0xff] %v368_v1 }
 0x1e6   :  { %598 = shalt.err (!%p595_p5)
}
 0x1e7   :  { %s619_s12 = smov 128   ;;  %s620_s13 = smov 8  }
 0x1e8   :  { %398 = dma.vmem_to_hbm [thread:$0]  %s393_s11, 1024, %s674_s5, [#allocation4], %s619_s12, %s619_s12, %s620_s13  }
 0x1e9   :  { %611 = dma.done.wait [#allocation4], 1024  }
 0x1ea   :  { %612 = vsyncadd [#allocation4], 4294966272 }
 0x1eb   :  { %402 = vsyncpa [#allocation3], 1 }
 0x1ec   :  { %403 = vsyncpa [#allocation6], 1 }
 0x1ed   :  { %404 = vsyncpa [#allocation4], 1 }

</bundles_post_ra>
